<compile_context>
chip_gen: v7x
topology: tpu7x:2x2x1
jax: 0.10.0
libtpu: 0.0.40
codegen_flags: <defaults>
</compile_context>

<pallas_src>
import functools

import jax
import jax.numpy as jnp
from jax.experimental import pallas as pl
from jax.experimental.pallas import tpu as pltpu


def _make_conv_stats_kernel(cin, ksz, tr, width, k_pad):
    """Pass 1: in-kernel im2col -> MXU matmul -> conv tile + per-tile stats."""
    tm = tr * width

    def kernel(band_ref, w_ref, conv_ref, stats_ref):
        # band_ref:  (Cin, TR + 2p, Wp) bf16  haloed row band (one grid step)
        # w_ref:     (Cout, K_pad)      bf16  resident (constant index_map)
        # conv_ref:  (Cout, TM)         f32   lane-dense conv output tile
        # stats_ref: (Cout, 2)          f32   per-tile [sum, sum_of_squares]
        band = band_ref[...]
        taps = []
        for c in range(cin):
            for di in range(ksz):
                for dj in range(ksz):
                    taps.append(band[c, di:di + tr, dj:dj + width])
        for _ in range(k_pad - cin * ksz * ksz):
            taps.append(jnp.zeros((tr, width), dtype=band.dtype))
        # (K_pad, TR, W) -> (K_pad, TM): im2col built entirely in VMEM/vregs.
        patches = jnp.stack(taps, axis=0).reshape(k_pad, tm)
        conv = jnp.dot(w_ref[...], patches, preferred_element_type=jnp.float32)
        conv_ref[...] = conv
        s = jnp.sum(conv, axis=1, keepdims=True)
        ss = jnp.sum(conv * conv, axis=1, keepdims=True)
        stats_ref[...] = jnp.concatenate([s, ss], axis=1)

    return kernel


def _bn_relu_kernel(conv_ref, scale_ref, shift_ref, o_ref):
    # Pass 2: fused (x - mean) * (gamma/std) + beta -> ReLU, lane-dense tiles.
    o_ref[...] = jnp.maximum(conv_ref[...] * scale_ref[...] + shift_ref[...], 0.0)


@functools.partial(jax.jit, static_argnames=("kernel_size",))
def conv_layer_deepfuse(x, weight, bias, bn_gamma, bn_beta, *, kernel_size=5):
    """x: (N, Cin, H, W) float32 (NCHW, like PyTorch). Returns (N, Cout, H, W)."""
    del bias  # A per-channel constant is cancelled exactly by train-mode BN centering.
    if kernel_size == 5:
        pad = 2
    elif kernel_size == 7:
        pad = 3
    else:
        raise ValueError("kernel_size must be 5 or 7")

    n, cin, h, w = x.shape
    cout = weight.shape[0]
    ksz = kernel_size
    wp = w + 2 * pad

    # Row-tile size TR: TM = TR*W must be a multiple of 128 lanes (unmasked stores).
    tr = None
    for cand in range(1, h + 1):
        if h % cand == 0 and (cand * w) % 128 == 0:
            tr = cand
            break
    if tr is None:
        tr = h  # fallback: whole image rows per tile (may use masked stores)
    trh = tr + 2 * pad
    tm = tr * w
    n_rt = h // tr
    t_tiles = n * n_rt
    m_total = n * h * w

    # --- glue: haloed row-bands (~1.5x input bytes vs 25x for full im2col) ---
    x_pad = jnp.pad(x, ((0, 0), (0, 0), (pad, pad), (pad, pad))).astype(jnp.bfloat16)
    bands = jnp.stack(
        [x_pad[:, :, rt * tr:rt * tr + trh, :] for rt in range(n_rt)], axis=1)
    bands = bands.reshape(t_tiles, cin, trh, wp)
    # TODO(synk): an overlapping (haloed) BlockSpec or manual DMA would remove even
    # this ~1.5x band copy; standard Blocked index maps cannot express overlap.

    # Weights: (Cout, Cin*k*k), K padded to a sublane-aligned K_pad, bf16.
    k_eff = cin * ksz * ksz
    k_pad = ((k_eff + 7) // 8) * 8
    w_mat = weight.reshape(cout, k_eff).astype(jnp.float32)
    if k_pad > k_eff:
        w_mat = jnp.concatenate(
            [w_mat, jnp.zeros((cout, k_pad - k_eff), jnp.float32)], axis=1)
    w_mat = w_mat.astype(jnp.bfloat16)

    # ---- pass 1: conv (MXU) + per-tile per-channel partial statistics ----
    conv_t, stats = pl.pallas_call(
        _make_conv_stats_kernel(cin, ksz, tr, w, k_pad),
        out_shape=(
            jax.ShapeDtypeStruct((cout, m_total), jnp.float32),
            jax.ShapeDtypeStruct((t_tiles, cout, 2), jnp.float32),
        ),
        grid=(t_tiles,),
        in_specs=[
            pl.BlockSpec((None, cin, trh, wp), lambda t: (t, 0, 0, 0)),
            pl.BlockSpec((cout, k_pad), lambda t: (0, 0)),
        ],
        out_specs=(
            pl.BlockSpec((cout, tm), lambda t: (0, t)),
            pl.BlockSpec((None, cout, 2), lambda t: (t, 0, 0)),
        ),
        compiler_params=pltpu.CompilerParams(
            dimension_semantics=("parallel",),
            vmem_limit_bytes=32 * 1024 * 1024),
    )(bands, w_mat)

    # ---- tiny glue: global batch stats (GLOBAL M) + folded per-channel affine ----
    tot = jnp.sum(stats, axis=0)                                   # (Cout, 2)
    mean = tot[:, 0] / float(m_total)
    var = jnp.maximum(tot[:, 1] / float(m_total) - mean * mean, 0.0)
    inv_std = jax.lax.rsqrt(var + 1e-5)
    g = bn_gamma.astype(jnp.float32)
    scale = (g * inv_std).reshape(cout, 1)
    shift = (bn_beta.astype(jnp.float32) - mean * g * inv_std).reshape(cout, 1)

    # ---- pass 2: normalize + ReLU over lane-dense (Cout, M) tiles ----
    if m_total % 128 == 0:
        tm2 = 128
        while tm2 * 2 <= 4096 and m_total % (tm2 * 2) == 0:
            tm2 *= 2
    else:
        tm2 = m_total
    y_t = pl.pallas_call(
        _bn_relu_kernel,
        out_shape=jax.ShapeDtypeStruct((cout, m_total), jnp.float32),
        grid=(m_total // tm2,),
        in_specs=[
            pl.BlockSpec((cout, tm2), lambda i: (0, i)),
            pl.BlockSpec((cout, 1), lambda i: (0, 0)),
            pl.BlockSpec((cout, 1), lambda i: (0, 0)),
        ],
        out_specs=pl.BlockSpec((cout, tm2), lambda i: (0, i)),
        compiler_params=pltpu.CompilerParams(
            dimension_semantics=("parallel",),
            vmem_limit_bytes=32 * 1024 * 1024),
    )(conv_t, scale, shift)

    # (Cout, N*H*W) -> NCHW: leading-axis transpose only (cheap).
    return y_t.reshape(cout, n, h, w).transpose(1, 0, 2, 3)


def _reference(x, weight, bias, bn_gamma, bn_beta, padding=2):
    """Pure-JAX f32 reference: conv -> train-mode BN -> ReLU."""
    conv = jax.lax.conv_general_dilated(
        x, weight, window_strides=(1, 1),
        padding=[(padding, padding), (padding, padding)],
        dimension_numbers=("NCHW", "OIHW", "NCHW"))
    conv = conv + bias.reshape(1, -1, 1, 1)
    mean = jnp.mean(conv, axis=(0, 2, 3), keepdims=True)
    var = jnp.mean((conv - mean) ** 2, axis=(0, 2, 3), keepdims=True)
    xhat = (conv - mean) / jnp.sqrt(var + 1e-5)
    out = xhat * bn_gamma.reshape(1, -1, 1, 1) + bn_beta.reshape(1, -1, 1, 1)
    return jnp.maximum(out, 0.0)


if __name__ == "__main__":
    key = jax.random.PRNGKey(0)
    k_x, k_w, k_b, k_g, k_be = jax.random.split(key, 5)

    # Module defaults: in_channels=1, out_channels=16, kernel_size=5
    N, CIN, H, W = 2, 1, 16, 16
    COUT, K = 16, 5

    x = jax.random.normal(k_x, (N, CIN, H, W), dtype=jnp.float32)
    weight = 0.1 * jax.random.normal(k_w, (COUT, CIN, K, K), dtype=jnp.float32)
    bias = 0.1 * jax.random.normal(k_b, (COUT,), dtype=jnp.float32)
    bn_gamma = 1.0 + 0.1 * jax.random.normal(k_g, (COUT,), dtype=jnp.float32)
    bn_beta = 0.1 * jax.random.normal(k_be, (COUT,), dtype=jnp.float32)

    out = conv_layer_deepfuse(x, weight, bias, bn_gamma, bn_beta, kernel_size=K)
    out = jax.block_until_ready(out)

    ref = _reference(x, weight, bias, bn_gamma, bn_beta, padding=2)
    assert out.shape == (N, COUT, H, W)
    err = float(jnp.max(jnp.abs(out - ref)))
    # Tolerance accounts for bf16 conv inputs/weights (f32 MXU accumulation).
    assert err < 5e-2, f"mismatch vs reference: {err}"

    print("KERNEL_OK")
</pallas_src>

<mosaic_0001>
module attributes {stable_mosaic.version = 11 : i64} {
  func.func @kernel(%arg0: i32, %arg1: memref<1x1x12x20xbf16, #tpu.memory_space<vmem>>, %arg2: memref<16x32xbf16, #tpu.memory_space<vmem>>, %arg3: memref<16x128xf32, #tpu.memory_space<vmem>>, %arg4: memref<1x16x2xf32, #tpu.memory_space<vmem>>) attributes {dimension_semantics = [#tpu.dimension_semantics<parallel>], iteration_bounds = array<i64: 4>, scalar_prefetch = 0 : i64, scratch_operands = 0 : i64, tpu.core_type = #tpu.core_type<tc>, window_params = [{transform_indices = @transform_0, window_bounds = array<i64: 1, 1, 12, 20>}, {pipeline_mode = #tpu.pipeline_mode<synchronous>, transform_indices = @transform_1, window_bounds = array<i64: 16, 32>}, {transform_indices = @transform_2, window_bounds = array<i64: 16, 128>}, {transform_indices = @transform_3, window_bounds = array<i64: 1, 16, 2>}]} {
    %c0 = arith.constant 0 : index
    %c0_0 = arith.constant 0 : index
    %c0_1 = arith.constant 0 : index
    %c0_2 = arith.constant 0 : index
    %0 = vector.load %arg1[%c0, %c0_0, %c0_1, %c0_2] : memref<1x1x12x20xbf16, #tpu.memory_space<vmem>>, vector<1x1x12x20xbf16>
    %1 = vector.shape_cast %0 : vector<1x1x12x20xbf16> to vector<1x12x20xbf16>
    %2 = vector.extract_strided_slice %1 {offsets = [0, 0, 0], sizes = [1, 8, 16], strides = [1, 1, 1]} : vector<1x12x20xbf16> to vector<1x8x16xbf16>
    %3 = vector.shape_cast %2 : vector<1x8x16xbf16> to vector<8x16xbf16>
    %4 = vector.extract_strided_slice %1 {offsets = [0, 0, 1], sizes = [1, 8, 16], strides = [1, 1, 1]} : vector<1x12x20xbf16> to vector<1x8x16xbf16>
    %5 = vector.shape_cast %4 : vector<1x8x16xbf16> to vector<8x16xbf16>
    %6 = vector.extract_strided_slice %1 {offsets = [0, 0, 2], sizes = [1, 8, 16], strides = [1, 1, 1]} : vector<1x12x20xbf16> to vector<1x8x16xbf16>
    %7 = vector.shape_cast %6 : vector<1x8x16xbf16> to vector<8x16xbf16>
    %8 = vector.extract_strided_slice %1 {offsets = [0, 0, 3], sizes = [1, 8, 16], strides = [1, 1, 1]} : vector<1x12x20xbf16> to vector<1x8x16xbf16>
    %9 = vector.shape_cast %8 : vector<1x8x16xbf16> to vector<8x16xbf16>
    %10 = vector.extract_strided_slice %1 {offsets = [0, 0, 4], sizes = [1, 8, 16], strides = [1, 1, 1]} : vector<1x12x20xbf16> to vector<1x8x16xbf16>
    %11 = vector.shape_cast %10 : vector<1x8x16xbf16> to vector<8x16xbf16>
    %12 = vector.extract_strided_slice %1 {offsets = [0, 1, 0], sizes = [1, 8, 16], strides = [1, 1, 1]} : vector<1x12x20xbf16> to vector<1x8x16xbf16>
    %13 = vector.shape_cast %12 : vector<1x8x16xbf16> to vector<8x16xbf16>
    %14 = vector.extract_strided_slice %1 {offsets = [0, 1, 1], sizes = [1, 8, 16], strides = [1, 1, 1]} : vector<1x12x20xbf16> to vector<1x8x16xbf16>
    %15 = vector.shape_cast %14 : vector<1x8x16xbf16> to vector<8x16xbf16>
    %16 = vector.extract_strided_slice %1 {offsets = [0, 1, 2], sizes = [1, 8, 16], strides = [1, 1, 1]} : vector<1x12x20xbf16> to vector<1x8x16xbf16>
    %17 = vector.shape_cast %16 : vector<1x8x16xbf16> to vector<8x16xbf16>
    %18 = vector.extract_strided_slice %1 {offsets = [0, 1, 3], sizes = [1, 8, 16], strides = [1, 1, 1]} : vector<1x12x20xbf16> to vector<1x8x16xbf16>
    %19 = vector.shape_cast %18 : vector<1x8x16xbf16> to vector<8x16xbf16>
    %20 = vector.extract_strided_slice %1 {offsets = [0, 1, 4], sizes = [1, 8, 16], strides = [1, 1, 1]} : vector<1x12x20xbf16> to vector<1x8x16xbf16>
    %21 = vector.shape_cast %20 : vector<1x8x16xbf16> to vector<8x16xbf16>
    %22 = vector.extract_strided_slice %1 {offsets = [0, 2, 0], sizes = [1, 8, 16], strides = [1, 1, 1]} : vector<1x12x20xbf16> to vector<1x8x16xbf16>
    %23 = vector.shape_cast %22 : vector<1x8x16xbf16> to vector<8x16xbf16>
    %24 = vector.extract_strided_slice %1 {offsets = [0, 2, 1], sizes = [1, 8, 16], strides = [1, 1, 1]} : vector<1x12x20xbf16> to vector<1x8x16xbf16>
    %25 = vector.shape_cast %24 : vector<1x8x16xbf16> to vector<8x16xbf16>
    %26 = vector.extract_strided_slice %1 {offsets = [0, 2, 2], sizes = [1, 8, 16], strides = [1, 1, 1]} : vector<1x12x20xbf16> to vector<1x8x16xbf16>
    %27 = vector.shape_cast %26 : vector<1x8x16xbf16> to vector<8x16xbf16>
    %28 = vector.extract_strided_slice %1 {offsets = [0, 2, 3], sizes = [1, 8, 16], strides = [1, 1, 1]} : vector<1x12x20xbf16> to vector<1x8x16xbf16>
    %29 = vector.shape_cast %28 : vector<1x8x16xbf16> to vector<8x16xbf16>
    %30 = vector.extract_strided_slice %1 {offsets = [0, 2, 4], sizes = [1, 8, 16], strides = [1, 1, 1]} : vector<1x12x20xbf16> to vector<1x8x16xbf16>
    %31 = vector.shape_cast %30 : vector<1x8x16xbf16> to vector<8x16xbf16>
    %32 = vector.extract_strided_slice %1 {offsets = [0, 3, 0], sizes = [1, 8, 16], strides = [1, 1, 1]} : vector<1x12x20xbf16> to vector<1x8x16xbf16>
    %33 = vector.shape_cast %32 : vector<1x8x16xbf16> to vector<8x16xbf16>
    %34 = vector.extract_strided_slice %1 {offsets = [0, 3, 1], sizes = [1, 8, 16], strides = [1, 1, 1]} : vector<1x12x20xbf16> to vector<1x8x16xbf16>
    %35 = vector.shape_cast %34 : vector<1x8x16xbf16> to vector<8x16xbf16>
    %36 = vector.extract_strided_slice %1 {offsets = [0, 3, 2], sizes = [1, 8, 16], strides = [1, 1, 1]} : vector<1x12x20xbf16> to vector<1x8x16xbf16>
    %37 = vector.shape_cast %36 : vector<1x8x16xbf16> to vector<8x16xbf16>
    %38 = vector.extract_strided_slice %1 {offsets = [0, 3, 3], sizes = [1, 8, 16], strides = [1, 1, 1]} : vector<1x12x20xbf16> to vector<1x8x16xbf16>
    %39 = vector.shape_cast %38 : vector<1x8x16xbf16> to vector<8x16xbf16>
    %40 = vector.extract_strided_slice %1 {offsets = [0, 3, 4], sizes = [1, 8, 16], strides = [1, 1, 1]} : vector<1x12x20xbf16> to vector<1x8x16xbf16>
    %41 = vector.shape_cast %40 : vector<1x8x16xbf16> to vector<8x16xbf16>
    %42 = vector.extract_strided_slice %1 {offsets = [0, 4, 0], sizes = [1, 8, 16], strides = [1, 1, 1]} : vector<1x12x20xbf16> to vector<1x8x16xbf16>
    %43 = vector.shape_cast %42 : vector<1x8x16xbf16> to vector<8x16xbf16>
    %44 = vector.extract_strided_slice %1 {offsets = [0, 4, 1], sizes = [1, 8, 16], strides = [1, 1, 1]} : vector<1x12x20xbf16> to vector<1x8x16xbf16>
    %45 = vector.shape_cast %44 : vector<1x8x16xbf16> to vector<8x16xbf16>
    %46 = vector.extract_strided_slice %1 {offsets = [0, 4, 2], sizes = [1, 8, 16], strides = [1, 1, 1]} : vector<1x12x20xbf16> to vector<1x8x16xbf16>
    %47 = vector.shape_cast %46 : vector<1x8x16xbf16> to vector<8x16xbf16>
    %48 = vector.extract_strided_slice %1 {offsets = [0, 4, 3], sizes = [1, 8, 16], strides = [1, 1, 1]} : vector<1x12x20xbf16> to vector<1x8x16xbf16>
    %49 = vector.shape_cast %48 : vector<1x8x16xbf16> to vector<8x16xbf16>
    %50 = vector.extract_strided_slice %1 {offsets = [0, 4, 4], sizes = [1, 8, 16], strides = [1, 1, 1]} : vector<1x12x20xbf16> to vector<1x8x16xbf16>
    %51 = vector.shape_cast %50 : vector<1x8x16xbf16> to vector<8x16xbf16>
    %cst = arith.constant 0.000000e+00 : bf16
    %52 = vector.broadcast %cst : bf16 to vector<8x16xbf16>
    %cst_3 = arith.constant 0.000000e+00 : bf16
    %53 = vector.broadcast %cst_3 : bf16 to vector<8x16xbf16>
    %cst_4 = arith.constant 0.000000e+00 : bf16
    %54 = vector.broadcast %cst_4 : bf16 to vector<8x16xbf16>
    %cst_5 = arith.constant 0.000000e+00 : bf16
    %55 = vector.broadcast %cst_5 : bf16 to vector<8x16xbf16>
    %cst_6 = arith.constant 0.000000e+00 : bf16
    %56 = vector.broadcast %cst_6 : bf16 to vector<8x16xbf16>
    %cst_7 = arith.constant 0.000000e+00 : bf16
    %57 = vector.broadcast %cst_7 : bf16 to vector<8x16xbf16>
    %cst_8 = arith.constant 0.000000e+00 : bf16
    %58 = vector.broadcast %cst_8 : bf16 to vector<8x16xbf16>
    %59 = vector.shape_cast %3 : vector<8x16xbf16> to vector<1x8x16xbf16>
    %60 = vector.shape_cast %5 : vector<8x16xbf16> to vector<1x8x16xbf16>
    %61 = vector.shape_cast %7 : vector<8x16xbf16> to vector<1x8x16xbf16>
    %62 = vector.shape_cast %9 : vector<8x16xbf16> to vector<1x8x16xbf16>
    %63 = vector.shape_cast %11 : vector<8x16xbf16> to vector<1x8x16xbf16>
    %64 = vector.shape_cast %13 : vector<8x16xbf16> to vector<1x8x16xbf16>
    %65 = vector.shape_cast %15 : vector<8x16xbf16> to vector<1x8x16xbf16>
    %66 = vector.shape_cast %17 : vector<8x16xbf16> to vector<1x8x16xbf16>
    %67 = vector.shape_cast %19 : vector<8x16xbf16> to vector<1x8x16xbf16>
    %68 = vector.shape_cast %21 : vector<8x16xbf16> to vector<1x8x16xbf16>
    %69 = vector.shape_cast %23 : vector<8x16xbf16> to vector<1x8x16xbf16>
    %70 = vector.shape_cast %25 : vector<8x16xbf16> to vector<1x8x16xbf16>
    %71 = vector.shape_cast %27 : vector<8x16xbf16> to vector<1x8x16xbf16>
    %72 = vector.shape_cast %29 : vector<8x16xbf16> to vector<1x8x16xbf16>
    %73 = vector.shape_cast %31 : vector<8x16xbf16> to vector<1x8x16xbf16>
    %74 = vector.shape_cast %33 : vector<8x16xbf16> to vector<1x8x16xbf16>
    %75 = vector.shape_cast %35 : vector<8x16xbf16> to vector<1x8x16xbf16>
    %76 = vector.shape_cast %37 : vector<8x16xbf16> to vector<1x8x16xbf16>
    %77 = vector.shape_cast %39 : vector<8x16xbf16> to vector<1x8x16xbf16>
    %78 = vector.shape_cast %41 : vector<8x16xbf16> to vector<1x8x16xbf16>
    %79 = vector.shape_cast %43 : vector<8x16xbf16> to vector<1x8x16xbf16>
    %80 = vector.shape_cast %45 : vector<8x16xbf16> to vector<1x8x16xbf16>
    %81 = vector.shape_cast %47 : vector<8x16xbf16> to vector<1x8x16xbf16>
    %82 = vector.shape_cast %49 : vector<8x16xbf16> to vector<1x8x16xbf16>
    %83 = vector.shape_cast %51 : vector<8x16xbf16> to vector<1x8x16xbf16>
    %84 = vector.shape_cast %52 : vector<8x16xbf16> to vector<1x8x16xbf16>
    %85 = vector.shape_cast %53 : vector<8x16xbf16> to vector<1x8x16xbf16>
    %86 = vector.shape_cast %54 : vector<8x16xbf16> to vector<1x8x16xbf16>
    %87 = vector.shape_cast %55 : vector<8x16xbf16> to vector<1x8x16xbf16>
    %88 = vector.shape_cast %56 : vector<8x16xbf16> to vector<1x8x16xbf16>
    %89 = vector.shape_cast %57 : vector<8x16xbf16> to vector<1x8x16xbf16>
    %90 = vector.shape_cast %58 : vector<8x16xbf16> to vector<1x8x16xbf16>
    %91 = tpu.concatenate %59, %60, %61, %62, %63, %64, %65, %66, %67, %68, %69, %70, %71, %72, %73, %74 in 0 : vector<1x8x16xbf16>, vector<1x8x16xbf16>, vector<1x8x16xbf16>, vector<1x8x16xbf16>, vector<1x8x16xbf16>, vector<1x8x16xbf16>, vector<1x8x16xbf16>, vector<1x8x16xbf16>, vector<1x8x16xbf16>, vector<1x8x16xbf16>, vector<1x8x16xbf16>, vector<1x8x16xbf16>, vector<1x8x16xbf16>, vector<1x8x16xbf16>, vector<1x8x16xbf16>, vector<1x8x16xbf16> -> vector<16x8x16xbf16>
    %92 = tpu.concatenate %75, %76, %77, %78, %79, %80, %81, %82, %83, %84, %85, %86, %87, %88, %89, %90 in 0 : vector<1x8x16xbf16>, vector<1x8x16xbf16>, vector<1x8x16xbf16>, vector<1x8x16xbf16>, vector<1x8x16xbf16>, vector<1x8x16xbf16>, vector<1x8x16xbf16>, vector<1x8x16xbf16>, vector<1x8x16xbf16>, vector<1x8x16xbf16>, vector<1x8x16xbf16>, vector<1x8x16xbf16>, vector<1x8x16xbf16>, vector<1x8x16xbf16>, vector<1x8x16xbf16>, vector<1x8x16xbf16> -> vector<16x8x16xbf16>
    %93 = tpu.concatenate %91, %92 in 0 : vector<16x8x16xbf16>, vector<16x8x16xbf16> -> vector<32x8x16xbf16>
    %94 = vector.shape_cast %93 : vector<32x8x16xbf16> to vector<32x128xbf16>
    %c0_9 = arith.constant 0 : index
    %c0_10 = arith.constant 0 : index
    %95 = vector.load %arg2[%c0_9, %c0_10] : memref<16x32xbf16, #tpu.memory_space<vmem>>, vector<16x32xbf16>
    %cst_11 = arith.constant dense<0.000000e+00> : vector<16x128xf32>
    %96 = tpu.matmul %95, %94, %cst_11 {dimension_numbers = #tpu.dot_dimension_numbers<[1], [0], [0], [1], [0, 0, 1, 1], [], []>} : vector<16x32xbf16>, vector<32x128xbf16>, vector<16x128xf32> -> vector<16x128xf32>
    %c0_12 = arith.constant 0 : index
    %c0_13 = arith.constant 0 : index
    %97 = vector.load %arg3[%c0_12, %c0_13] : memref<16x128xf32, #tpu.memory_space<vmem>>, vector<16x128xf32>
    tpu.vector_store %arg3[%c0_12, %c0_13], %96 {strides = array<i32>} : memref<16x128xf32, #tpu.memory_space<vmem>>, vector<16x128xf32>,
    %cst_14 = arith.constant dense<0.000000e+00> : vector<16xf32>
    %98 = vector.multi_reduction <add>, %96, %cst_14 [1] : vector<16x128xf32> to vector<16xf32>
    %99 = vector.shape_cast %98 : vector<16xf32> to vector<16x1xf32>
    %100 = arith.mulf %96, %96 : vector<16x128xf32>
    %cst_15 = arith.constant dense<0.000000e+00> : vector<16xf32>
    %101 = vector.multi_reduction <add>, %100, %cst_15 [1] : vector<16x128xf32> to vector<16xf32>
    %102 = vector.shape_cast %101 : vector<16xf32> to vector<16x1xf32>
    %103 = tpu.concatenate %99, %102 in 1 : vector<16x1xf32>, vector<16x1xf32> -> vector<16x2xf32>
    %c0_16 = arith.constant 0 : index
    %c0_17 = arith.constant 0 : index
    %c0_18 = arith.constant 0 : index
    %104 = vector.load %arg4[%c0_16, %c0_17, %c0_18] : memref<1x16x2xf32, #tpu.memory_space<vmem>>, vector<1x16x2xf32>
    %105 = vector.shape_cast %104 : vector<1x16x2xf32> to vector<16x2xf32>
    %106 = vector.shape_cast %103 : vector<16x2xf32> to vector<1x16x2xf32>
    tpu.vector_store %arg4[%c0_16, %c0_17, %c0_18], %106 {strides = array<i32>} : memref<1x16x2xf32, #tpu.memory_space<vmem>>, vector<1x16x2xf32>,
    return
  }
  func.func @transform_0(%arg0: i32) -> (i32, i32, i32, i32) {
    %c0_i32 = arith.constant 0 : i32
    %c0_i32_0 = arith.constant 0 : i32
    %c0_i32_1 = arith.constant 0 : i32
    %c0_i32_2 = arith.constant 0 : i32
    return %arg0, %c0_i32, %c0_i32_0, %c0_i32_1 : i32, i32, i32, i32
  }
  func.func @transform_1(%arg0: i32) -> (i32, i32) {
    %c0_i32 = arith.constant 0 : i32
    %c0_i32_0 = arith.constant 0 : i32
    %c0_i32_1 = arith.constant 0 : i32
    return %c0_i32, %c0_i32_0 : i32, i32
  }
  func.func @transform_2(%arg0: i32) -> (i32, i32) {
    %c0_i32 = arith.constant 0 : i32
    %c0_i32_0 = arith.constant 0 : i32
    return %c0_i32, %arg0 : i32, i32
  }
  func.func @transform_3(%arg0: i32) -> (i32, i32, i32) {
    %c0_i32 = arith.constant 0 : i32
    %c0_i32_0 = arith.constant 0 : i32
    %c0_i32_1 = arith.constant 0 : i32
    return %arg0, %c0_i32, %c0_i32_0 : i32, i32, i32
  }
}

module attributes {stable_mosaic.version = 11 : i64} {
  func.func @_bn_relu_kernel(%arg0: i32, %arg1: memref<16x512xf32, #tpu.memory_space<vmem>>, %arg2: memref<16x1xf32, #tpu.memory_space<vmem>>, %arg3: memref<16x1xf32, #tpu.memory_space<vmem>>, %arg4: memref<16x512xf32, #tpu.memory_space<vmem>>) attributes {dimension_semantics = [#tpu.dimension_semantics<parallel>], iteration_bounds = array<i64: 1>, scalar_prefetch = 0 : i64, scratch_operands = 0 : i64, tpu.core_type = #tpu.core_type<tc>, window_params = [{transform_indices = @transform_0, window_bounds = array<i64: 16, 512>}, {pipeline_mode = #tpu.pipeline_mode<synchronous>, transform_indices = @transform_1, window_bounds = array<i64: 16, 1>}, {pipeline_mode = #tpu.pipeline_mode<synchronous>, transform_indices = @transform_2, window_bounds = array<i64: 16, 1>}, {transform_indices = @transform_3, window_bounds = array<i64: 16, 512>}]} {
    %c0 = arith.constant 0 : index
    %c0_0 = arith.constant 0 : index
    %0 = vector.load %arg1[%c0, %c0_0] : memref<16x512xf32, #tpu.memory_space<vmem>>, vector<16x512xf32>
    %c0_1 = arith.constant 0 : index
    %c0_2 = arith.constant 0 : index
    %1 = vector.load %arg2[%c0_1, %c0_2] : memref<16x1xf32, #tpu.memory_space<vmem>>, vector<16x1xf32>
    %2 = vector.broadcast %1 : vector<16x1xf32> to vector<16x512xf32>
    %3 = arith.mulf %0, %2 : vector<16x512xf32>
    %c0_3 = arith.constant 0 : index
    %c0_4 = arith.constant 0 : index
    %4 = vector.load %arg3[%c0_3, %c0_4] : memref<16x1xf32, #tpu.memory_space<vmem>>, vector<16x1xf32>
    %5 = vector.broadcast %4 : vector<16x1xf32> to vector<16x512xf32>
    %6 = arith.addf %3, %5 : vector<16x512xf32>
    %cst = arith.constant 0.000000e+00 : f32
    %7 = vector.broadcast %cst : f32 to vector<16x512xf32>
    %8 = arith.maximumf %6, %7 : vector<16x512xf32>
    %c0_5 = arith.constant 0 : index
    %c0_6 = arith.constant 0 : index
    %9 = vector.load %arg4[%c0_5, %c0_6] : memref<16x512xf32, #tpu.memory_space<vmem>>, vector<16x512xf32>
    tpu.vector_store %arg4[%c0_5, %c0_6], %8 {strides = array<i32>} : memref<16x512xf32, #tpu.memory_space<vmem>>, vector<16x512xf32>,
    return
  }
  func.func @transform_0(%arg0: i32) -> (i32, i32) {
    %c0_i32 = arith.constant 0 : i32
    %c0_i32_0 = arith.constant 0 : i32
    return %c0_i32, %arg0 : i32, i32
  }
  func.func @transform_1(%arg0: i32) -> (i32, i32) {
    %c0_i32 = arith.constant 0 : i32
    %c0_i32_0 = arith.constant 0 : i32
    %c0_i32_1 = arith.constant 0 : i32
    return %c0_i32, %c0_i32_0 : i32, i32
  }
  func.func @transform_2(%arg0: i32) -> (i32, i32) {
    %c0_i32 = arith.constant 0 : i32
    %c0_i32_0 = arith.constant 0 : i32
    %c0_i32_1 = arith.constant 0 : i32
    return %c0_i32, %c0_i32_0 : i32, i32
  }
  func.func @transform_3(%arg0: i32) -> (i32, i32) {
    %c0_i32 = arith.constant 0 : i32
    %c0_i32_0 = arith.constant 0 : i32
    return %c0_i32, %arg0 : i32, i32
  }
}

</mosaic_0001>

<bundles_post_ra>
// kernel: conv_layer_deepfuse.3
= control target key start
LH: loop header
LB: loop body
LE: loop exit
PB: predicated region body
PF: predicated region fallthrough
CT: control target
= control target key end

     0   :  { %v85_v0 = vmov 0   ;;  %s166_s2 = inlined_call_operand.vmem [shape: f32[16,1], index: 2, kind: input, shape index: {}]   ;;  %s167_s1 = inlined_call_operand.vmem [shape: f32[16,1], index: 1, kind: input, shape index: {}]   ;;  %s168_s0 = inlined_call_operand.vmem [shape: f32[16,512], index: 0, kind: input, shape index: {}]   ;;  %s169_s3 = inlined_call_operand.vmem [shape: f32[16,512], index: 3, kind: output, shape index: {}]  }
   0x1   :  { %84 = vset.pattern.permute.xlu1 %v85_v0  ;;  %83 = vset.pattern.permute.xlu0 %v85_v0  ;;  %v42_v1 = vld [vmem:[%s166_s2] sm:$0xff]  ;;  %v43_v3 = vld [vmem:[%s166_s2 + $0x8] sm:$0xff]  ;;  %v16_v7 = vld [vmem:[%s168_s0 + $0x10] sm:$0xff] }
   0x2   :  { %v22_v2 = vld [vmem:[%s167_s1] sm:$0xff]  ;;  %46 = vperm.xlu1 %84, %v42_v1   ;;  %v23_v4 = vld [vmem:[%s167_s1 + $0x8] sm:$0xff]  ;;  %v17_v8 = vld [vmem:[%s168_s0 + $0x18] sm:$0xff] }
   0x3   :  { %26 = vperm.xlu0 %83, %v22_v2   ;;  %v14_v5 = vld [vmem:[%s168_s0] sm:$0xff]  ;;  %v15_v6 = vld [vmem:[%s168_s0 + $0x8] sm:$0xff]  ;;  %v20_v21 = vld [vmem:[%s168_s0 + $0x30] sm:$0xff] }
   0x4   :  { %v18_v15 = vld [vmem:[%s168_s0 + $0x20] sm:$0xff]  ;;  %v19_v20 = vld [vmem:[%s168_s0 + $0x28] sm:$0xff]  ;;  %v21_v22 = vld [vmem:[%s168_s0 + $0x38] sm:$0xff] }
   0x6   :  { %51 = vperm.xlu1 %84, %v43_v3  }
   0x7   :  { %31 = vperm.xlu0 %83, %v23_v4  }
  0x81   :  { %v47_v10 = vpop.permute.xlu1 %46 }
  0x82   :  { %v27_v9 = vpop.permute.xlu0 %26 }
  0x83   :  { %v34_v11 = vmul.f32 %v27_v9, %v14_v5  ;;  %v35_v12 = vmul.f32 %v27_v9, %v15_v6  ;;  %v36_v13 = vmul.f32 %v27_v9, %v16_v7  ;;  %v37_v14 = vmul.f32 %v27_v9, %v17_v8 }
  0x85   :  { %v54_v16 = vadd.f32 %v47_v10, %v34_v11  ;;  %v55_v17 = vadd.f32 %v47_v10, %v35_v12  ;;  %v56_v18 = vadd.f32 %v47_v10, %v36_v13  ;;  %v57_v19 = vadd.f32 %v47_v10, %v37_v14  ;;  %v52_v32 = vpop.permute.xlu1 %51 }
  0x86   :  { %v32_v23 = vpop.permute.xlu0 %31 }
  0x87   :  { %v62_v24 = vmax.f32 %v54_v16, 0.0  ;;  %v63_v25 = vmax.f32 %v55_v17, 0.0  ;;  %v64_v26 = vmax.f32 %v56_v18, 0.0  ;;  %v65_v27 = vmax.f32 %v57_v19, 0.0 }
  0x88   :  { %v38_v28 = vmul.f32 %v32_v23, %v18_v15  ;;  %v39_v29 = vmul.f32 %v32_v23, %v19_v20  ;;  %v40_v30 = vmul.f32 %v32_v23, %v20_v21  ;;  %v41_v31 = vmul.f32 %v32_v23, %v21_v22 }
  0x89   :  { %70 = vst [vmem:[%s169_s3] sm:$0xff] %v62_v24  ;;  %71 = vst [vmem:[%s169_s3 + $0x8] sm:$0xff] %v63_v25 }
  0x8a   :  { %72 = vst [vmem:[%s169_s3 + $0x10] sm:$0xff] %v64_v26  ;;  %73 = vst [vmem:[%s169_s3 + $0x18] sm:$0xff] %v65_v27  ;;  %v58_v33 = vadd.f32 %v52_v32, %v38_v28  ;;  %v59_v34 = vadd.f32 %v52_v32, %v39_v29  ;;  %v60_v35 = vadd.f32 %v52_v32, %v40_v30 }
  0x8b   :  { %v61_v36 = vadd.f32 %v52_v32, %v41_v31 }
  0x8c   :  { %v66_v37 = vmax.f32 %v58_v33, 0.0  ;;  %v67_v38 = vmax.f32 %v59_v34, 0.0  ;;  %v68_v39 = vmax.f32 %v60_v35, 0.0 }
  0x8d   :  { %v69_v40 = vmax.f32 %v61_v36, 0.0 }
  0x8e   :  { %74 = vst [vmem:[%s169_s3 + $0x20] sm:$0xff] %v66_v37  ;;  %75 = vst [vmem:[%s169_s3 + $0x28] sm:$0xff] %v67_v38 }
  0x8f   :  { %76 = vst [vmem:[%s169_s3 + $0x30] sm:$0xff] %v68_v39  ;;  %77 = vst [vmem:[%s169_s3 + $0x38] sm:$0xff] %v69_v40 }

// kernel: conv_layer_deepfuse.2
= control target key start
LH: loop header
LB: loop body
LE: loop exit
PB: predicated region body
PF: predicated region fallthrough
CT: control target
= control target key end

     0   :  { %s1275_s12 = smov 0   ;;  %s1277_s13 = smov 0   ;;  %s1567_s0 = inlined_call_operand.vmem [shape: bf16[4,1,12,20], index: 0, kind: input, shape index: {}]   ;;  %s1568_s1 = inlined_call_operand.vmem [shape: bf16[16,32], index: 1, kind: input, shape index: {}]   ;;  %s1569_s2 = inlined_call_operand.vmem [shape: f32[16,512], index: 2, kind: output, shape index: {0}]   ;;  %s1570_s3 = inlined_call_operand.vmem [shape: f32[4,16,2], index: 3, kind: output, shape index: {1}]  }
   0x1   :  { %s1279_s14 = smov 0  }
   0x2 LB: > { %s1288_s15 = sadd.s32 4294967295, %s1236_s14   ;;  %s1290_s16 = sadd.s32 1, %s1236_s14   ;;  %s1236_s14 = sphi %s1279_s14, %s1576_s14   ;;  %s1232_s13 = sphi %s1277_s13, %s1575_s13   ;;  %s1228_s12 = sphi %s1275_s12, %s1574_s12  }
   0x3   : > { %s65_s17 = ssub.s32 %s1236_s14, %s1290_s16  ;;  %s68_s18 = sadd.s32 1, %s1232_s13 }
   0x4   : > { %p66_p0 = scmp.eq.s32.totalorder %s65_s17, 0  ;;  %p78_p1 = scmp.ne.s32.totalorder %s1232_s13, %s1228_s12 }
   0x5   : > { %p79_p2 = scmp.eq.s32.totalorder %s1288_s15, 3  ;;  %p1130_p3 = scmp.ge.s32.totalorder %s1236_s14, 1 }
   0x6   : > { %s1298_s19 = scalar_select %p66_p0, %s1232_s13, %s68_s18  }
   0x7   : > { %p1300_p4 = por %p79_p2, %p78_p1  ;;  %p140_p5 = scmp.lt.s32.totalorder %s1236_s14, 5 }
   0x9   : > { %p141_p6 = pnand %p1130_p3, %p140_p5 }
   0xa   : > { %p168_p7 = scmp.lt.s32.totalorder (!%p141_p6), %s1288_s15, 3  ;;  %s1238_s26 = smov (!%p141_p6), 125   ;;  %vm194_vm0 = vsmask.f32 (!%p141_p6), 3328  ;;  %vm195_vm1 = vsmask.f32 (!%p141_p6), 7440 }
   0xb   : > { %144 = sbr.rel (%p141_p6) target bundleno = 801 (0x321), region = 28  ;;  %s1239_s27 = smov (!%p141_p6), 127   ;;  %vm196_vm2 = vmor (!%p141_p6), %vm194_vm0, %vm195_vm1  ;;  %vm225_vm3 = vcmask (!%p141_p6), 1042432   ;;  %vm226_vm4 = vcmask (!%p141_p6), 1046532   ;;  %vm245_vm6 = vsmask.f32 (!%p141_p6), 2304 }
   0xc   : > { %s1240_s28 = smov (!%p141_p6), 126   ;;  %s1241_s29 = smov (!%p141_p6), 1   ;;  %vm227_vm5 = vmor (!%p141_p6), %vm225_vm3, %vm226_vm4  ;;  %vm246_vm7 = vsmask.f32 (!%p141_p6), 6416  ;;  %vm890_vm9 = vcmask (!%p141_p6), 130048   ;;  %vm897_vm10 = vcmask (!%p141_p6), 261120  }
   0xd   : > { %s1242_s30 = smov (!%p141_p6), 124   ;;  %vm1348_vm8 = vmor (!%p141_p6), %vm245_vm6, %vm246_vm7  ;;  %s1246_s4 = smov (!%p141_p6), 64   ;;  %vm902_vm11 = vcmask (!%p141_p6), 392192   ;;  %vm1254_vm12 = vmmov (!%p141_p6), 0   ;;  %vm907_vm13 = vcmask (!%p141_p6), 523264   ;;  %vm912_vm14 = vcmask (!%p141_p6), 654336  }
   0xe   : > { %s1247_s5 = smov (!%p141_p6), 16   ;;  %s1248_s6 = smov (!%p141_p6), 32   ;;  %vm917_vm15 = vcmask (!%p141_p6), 785408   ;;  %vm922_vm0 = vcmask (!%p141_p6), 916480   ;;  %vm992_vm1 = vcmask (!%p141_p6), 7168  }
   0xf   : > { %s1250_s7 = smov (!%p141_p6), 48   ;;  %s1251_s8 = smov (!%p141_p6), 80  }
  0x10   : > { %s1252_s9 = smov (!%p141_p6), 96   ;;  %s1253_s10 = smov (!%p141_p6), 112  }
  0x11   : > { %s158_s17 = sand.u32 (!%p141_p6), 1, %s1228_s12  }
  0x12   : > { %s1306_s21 = scalar_select %p168_p7, %s1288_s15, 3 }
  0x13   : > { %s1131_s18 = sshll.u32 %s158_s17, 4 }
  0x14   : > { %s1159_s22 = sshll.u32 %s1306_s21, 3  ;;  %s1160_s23 = sshll.u32 %s1306_s21, 4 }
  0x15   : > { %s172_s25 = scalar_lea.vmem %s1567_s0, %s1159_s22  ;;  %s160_s22 = scalar_lea.vmem [#allocation2], %s1131_s18 }
  0x16   : > { %v1312_v0 = vld [vmem:[%s172_s25] sm:$0xf]  ;;  %v180_v1 = vld [vmem:[%s172_s25 + $0x4] sm:$0x3]  ;;  %s177_s25 = scalar_lea.vmem %s1570_s3, %s1160_s23 }
  0x17   : > { %188 = vrot.lane.b32.xlu1 %v1312_v0, %s1238_s26  ;;  %182 = vrot.lane.b32.xlu0 %v1312_v0, %s1239_s27  ;;  %v198_v2 = vshrl.u32 %v1312_v0, 16  ;;  %v201_v3 = vshll.u32 %v1312_v0, 16  ;;  %v207_v4 = vshll.u32 %v180_v1, 16  ;;  %v252_v7 = vshrl.u32 %v180_v1, 16 }
  0x18   : > { %v1136_v17 = vrot.slane %v1312_v0, 9  ;;  %v230_v18 = vrot.slane %v180_v1, 5 }
  0x19   : > { %v200_v5 = vrot.slane %v198_v2, 4  ;;  %v203_v6 = vrot.slane %v201_v3, 5  ;;  %v209_v9 = vrot.slane %v207_v4, 5  ;;  %v265_v11 = vrot.slane %v252_v7, 4 }
  0x1a   : > { %v248_v19 = vrot.slane %v198_v2, 5  ;;  %v249_v20 = vrot.slane %v201_v3, 6  ;;  %v1342_v25 = vsel %vm227_vm5, %v1136_v17, %v230_v18  ;;  %v254_v26 = vrot.slane %v252_v7, 5 }
  0x1b   : > { %259 = vrot.lane.b32.xlu1 %v180_v1, %s1239_s27  ;;  %185 = vrot.lane.b32.xlu0 %v1312_v0, %s1240_s28  ;;  %v204_v8 = vor.u32 %v203_v6, %v200_v5  ;;  %v266_v13 = vor.u32 %v265_v11, %v209_v9  ;;  %v255_v27 = vrot.slane %v207_v4, 6  ;;  %v1243_v11 = vmov 1983009808  }
  0x1c   : > { %v250_v31 = vor.u32 %v249_v20, %v248_v19  ;;  %v1244_v18 = vmov 1934713408  }
  0x1d   : > { %v205_v10 = vrot.slane %v204_v8, 4  ;;  %v267_v14 = vrot.slane %v266_v13, 4  ;;  %v256_v35 = vor.u32 %v255_v27, %v254_v26  ;;  %v464_v13 = vunpack.c.l.s4 %v1243_v11 }
  0x1e   : > { %v251_v34 = vrot.slane %v250_v31, 4  ;;  %v1383_v19 = vunpack.c.l.s4 %v1244_v18 }
  0x1f   : > { %263 = vrot.lane.b32.xlu1 %v180_v1, %s1238_s26  ;;  %261 = vrot.lane.b32.xlu0 %v180_v1, %s1240_s28  ;;  %v1325_v12 = vsel %vm196_vm2, %v205_v10, %v209_v9  ;;  %v360_v23 = vshrl.u32 %v267_v14, 16  ;;  %v363_v24 = vshll.u32 %v267_v14, 16  ;;  %vm995_vm2 = vcmask 15360  }
  0x20   : > { %v351_v15 = vshrl.u32 %v1325_v12, 16  ;;  %v354_v16 = vshll.u32 %v1325_v12, 16  ;;  %v1359_v38 = vsel %vm1348_vm8, %v251_v34, %v256_v35 }
  0x21   : > { %v362_v29 = vrot.slane %v360_v23, 5  ;;  %v365_v30 = vrot.slane %v363_v24, 6  ;;  %v1245_v24 = vmov 0  }
  0x22   : > { %v353_v21 = vrot.slane %v351_v15, 5  ;;  %v356_v22 = vrot.slane %v354_v16, 6  ;;  %v425_v26 = vrot.slane %v1245_v24, 5  ;;  %v428_v27 = vrot.slane %v1245_v24, 6 }
  0x23   : > { %215 = vrot.lane.b32.xlu0 %v1325_v12, %s1240_s28  ;;  %212 = vrot.lane.b32.xlu1 %v1325_v12, %s1239_s27  ;;  %v366_v33 = vor.u32 %v365_v30, %v362_v29 }
  0x24   : > { %v357_v28 = vor.u32 %v356_v22, %v353_v21 }
  0x26   : > { %v358_v32 = vrot.slane %v357_v28, 4 }
  0x27   : > { %268 = vrot.lane.b32.xlu0 %v1325_v12, %s1241_s29  ;;  %218 = vrot.lane.b32.xlu1 %v1325_v12, %s1238_s26 }
  0x28   : > { %v367_v37 = vsel %vm1348_vm8, %v358_v32, %v366_v33 }
  0x2b   : > { %270 = vrot.lane.b32.xlu0 %v267_v14, %s1241_s29  ;;  %272 = vrot.lane.b32.xlu1 %v267_v14, %s1239_s27 }
  0x2f   : > { %274 = vrot.lane.b32.xlu0 %v267_v14, %s1240_s28  ;;  %276 = vrot.lane.b32.xlu1 %v267_v14, %s1238_s26  ;;  %v466_v14 = vlaneseq }
  0x33   : > { %191 = vrot.lane.b32.xlu0 %v1312_v0, %s1242_s30  ;;  %221 = vrot.lane.b32.xlu1 %v1325_v12, %s1242_s30 }
  0x37   : > { %233 = vrot.lane.b32.xlu0 %v1342_v25, %s1239_s27  ;;  %236 = vrot.lane.b32.xlu1 %v1342_v25, %s1240_s28 }
  0x3b   : > { %239 = vrot.lane.b32.xlu0 %v1342_v25, %s1238_s26  ;;  %242 = vrot.lane.b32.xlu1 %v1342_v25, %s1242_s30  ;;  %s1156_s26 = sshll.u32 (%p1300_p4), %s1288_s15, 3 }
  0x3c   : > { %s1011_s28 = scalar_lea.vmem (%p1300_p4), %s1569_s2, %s1156_s26 }
  0x3f   : > { %442 = vrot.lane.b32.xlu1 %v367_v37, %s1239_s27  ;;  %432 = vrot.lane.b32.xlu0 %v1359_v38, %s1239_s27  ;;  %v1398_v37 = vshrl.u32 %v466_v14, 7 }
  0x89   : > { %v1364_v39 = vpop.permute.xlu1 %188  ;;  %v1366_v40 = vpop.permute.xlu0 %182 }
  0x8a   : > { %v315_v41 = vshrl.u32 %v1364_v39, 16  ;;  %v318_v42 = vshll.u32 %v1364_v39, 16  ;;  %v279_v43 = vshrl.u32 %v1366_v40, 16  ;;  %v282_v44 = vshll.u32 %v1366_v40, 16 }
  0x8c   : > { %v281_v45 = vrot.slane %v279_v43, 5  ;;  %v284_v46 = vrot.slane %v282_v44, 6  ;;  %v317_v47 = vrot.slane %v315_v41, 5  ;;  %v320_v48 = vrot.slane %v318_v42, 6 }
  0x8d   : > { %v260_v49 = vpop.permute.xlu1 %259  ;;  %v1372_v50 = vpop.permute.xlu0 %185  ;;  %v465_v42 = vunpack.c.0.s8 %v464_v13  ;;  %v482_v43 = vunpack.c.0.s8 %v1383_v19 }
  0x8e   : > { %v285_v51 = vor.u32 %v284_v46, %v281_v45  ;;  %v288_v52 = vshrl.u32 %v260_v49, 16  ;;  %v291_v53 = vshll.u32 %v260_v49, 16  ;;  %v297_v54 = vshrl.u32 %v1372_v50, 16 }
  0x8f   : > { %v300_v55 = vshll.u32 %v1372_v50, 16  ;;  %v321_v58 = vor.u32 %v320_v48, %v317_v47  ;;  %v1402_v45 = vor.u32 %v428_v27, %v425_v26 }
  0x90   : > { %v290_v56 = vrot.slane %v288_v52, 5  ;;  %v293_v57 = vrot.slane %v291_v53, 6  ;;  %v299_v59 = vrot.slane %v297_v54, 5  ;;  %v286_v63 = vrot.slane %v285_v51, 4 }
  0x91   : > { %v302_v60 = vrot.slane %v300_v55, 6  ;;  %v264_v61 = vpop.permute.xlu1 %263  ;;  %v262_v62 = vpop.permute.xlu0 %261  ;;  %v322_v21 = vrot.slane %v321_v58, 4 }
  0x92   : > { %v294_v1 = vor.u32 %v293_v57, %v290_v56  ;;  %v324_v2 = vshrl.u32 %v264_v61, 16  ;;  %v327_v3 = vshll.u32 %v264_v61, 16  ;;  %v306_v4 = vshrl.u32 %v262_v62, 16 }
  0x93   : > { %v303_v5 = vor.u32 %v302_v60, %v299_v59  ;;  %v309_v6 = vshll.u32 %v262_v62, 16  ;;  %v1407_v61 = vsub.s32 %v465_v42, %v1398_v37 }
  0x94   : > { %v326_v7 = vrot.slane %v324_v2, 5  ;;  %v329_v8 = vrot.slane %v327_v3, 6  ;;  %v308_v9 = vrot.slane %v306_v4, 5  ;;  %v295_v10 = vsel %vm1348_vm8, %v286_v63, %v294_v1 }
  0x95   : > { %v311_v15 = vrot.slane %v309_v6, 6  ;;  %v1378_v16 = vpop.permute.xlu0 %215  ;;  %v1380_v17 = vpop.permute.xlu1 %212  ;;  %434 = vrot.lane.b32.xlu1 %v295_v10, %s1239_s27  ;;  %v304_v23 = vrot.slane %v303_v5, 4  ;;  %v430_v1 = vrot.slane %v1402_v45, 4 }
  0x96   : > { %v330_v20 = vor.u32 %v329_v8, %v326_v7  ;;  %v387_v28 = vshrl.u32 %v1378_v16, 16  ;;  %v390_v29 = vshll.u32 %v1378_v16, 16  ;;  %v369_v30 = vshrl.u32 %v1380_v17, 16 }
  0x97   : > { %v312_v22 = vor.u32 %v311_v15, %v308_v9  ;;  %v372_v32 = vshll.u32 %v1380_v17, 16  ;;  %v504_v62 = vcombine.low %v1364_v39, %v1378_v16  ;;  %v496_v39 = vcombine.low %v1366_v40, %v1325_v12 }
  0x98   : > { %v331_v31 = vsel %vm1348_vm8, %v322_v21, %v330_v20  ;;  %v389_v46 = vrot.slane %v387_v28, 5  ;;  %v392_v47 = vrot.slane %v390_v29, 6  ;;  %v371_v48 = vrot.slane %v369_v30, 5 }
  0x99   : > { %v313_v33 = vsel %vm1348_vm8, %v304_v23, %v312_v22  ;;  %v269_v34 = vpop.permute.xlu0 %268  ;;  %v1395_v35 = vpop.permute.xlu1 %218  ;;  %438 = vrot.lane.b32.xlu1 %v331_v31, %s1239_s27  ;;  %v374_v51 = vrot.slane %v372_v32, 6  ;;  %v470_v16 = vcombine.low %v1372_v50, %v1380_v17  ;;  %v511_v27 = vrot.slane %v504_v62, %v1407_v61 }
  0x9a   : > { %436 = vrot.lane.b32.xlu0 %v313_v33, %s1239_s27  ;;  %v333_v41 = vshrl.u32 %v269_v34, 16  ;;  %v336_v44 = vshll.u32 %v269_v34, 16  ;;  %v405_v53 = vshrl.u32 %v1395_v35, 16  ;;  %v408_v54 = vshll.u32 %v1395_v35, 16 }
  0x9b   : > { %v393_v6 = vor.u32 %v392_v47, %v389_v46  ;;  %v375_v7 = vor.u32 %v374_v51, %v371_v48  ;;  %v503_v33 = vrot.slane %v496_v39, %v1407_v61  ;;  %v477_v34 = vrot.slane %v470_v16, %v1407_v61 }
  0x9c   : > { %v335_v49 = vrot.slane %v333_v41, 5  ;;  %v338_v52 = vrot.slane %v336_v44, 6  ;;  %v407_v8 = vrot.slane %v405_v53, 5  ;;  %v410_v9 = vrot.slane %v408_v54, 6 }
  0x9d   : > { %v271_v55 = vpop.permute.xlu0 %270  ;;  %v273_v56 = vpop.permute.xlu1 %272  ;;  %v394_v12 = vrot.slane %v393_v6, 4  ;;  %v376_v17 = vrot.slane %v375_v7, 4  ;;  %v1429_v47 = vsub.s32 %v482_v43, %v1398_v37  ;;  %v512_v48 = vcombine.low %v503_v33, %v511_v27 }
  0x9e   : > { %v342_v57 = vshrl.u32 %v271_v55, 16  ;;  %v345_v58 = vshll.u32 %v271_v55, 16  ;;  %v378_v59 = vshrl.u32 %v273_v56, 16  ;;  %v381_v60 = vshll.u32 %v273_v56, 16 }
  0x9f   : > { %v339_v63 = vor.u32 %v338_v52, %v335_v49  ;;  %v411_v40 = vor.u32 %v410_v9, %v407_v8  ;;  %v431_v54 = vsel %vm1348_vm8, %v430_v1, %v1402_v45  ;;  %v520_v56 = vrot.slane %v512_v48, %v1429_v47 }
  0xa0   : > { %v344_v2 = vrot.slane %v342_v57, 5  ;;  %v347_v3 = vrot.slane %v345_v58, 6  ;;  %v380_v4 = vrot.slane %v378_v59, 5  ;;  %v383_v5 = vrot.slane %v381_v60, 6 }
  0xa1   : > { %v275_v10 = vpop.permute.xlu0 %274  ;;  %v277_v11 = vpop.permute.xlu1 %276  ;;  %v340_v13 = vrot.slane %v339_v63, 4  ;;  %v412_v53 = vrot.slane %v411_v40, 4  ;;  %v513_v62 = vcombine.high %v503_v33, %v511_v27 }
  0xa2   : > { %v348_v14 = vor.u32 %v347_v3, %v344_v2  ;;  %v396_v15 = vshrl.u32 %v275_v10, 16  ;;  %v399_v18 = vshll.u32 %v275_v10, 16  ;;  %v414_v19 = vshrl.u32 %v277_v11, 16 }
  0xa3   : > { %v417_v20 = vshll.u32 %v277_v11, 16  ;;  %v384_v21 = vor.u32 %v383_v5, %v380_v4  ;;  %v527_v7 = vrot.slane %v513_v62, %v1429_v47 }
  0xa4   : > { %v398_v22 = vrot.slane %v396_v15, 5  ;;  %v401_v23 = vrot.slane %v399_v18, 6  ;;  %v349_v26 = vsel %vm1348_vm8, %v340_v13, %v348_v14  ;;  %v416_v28 = vrot.slane %v414_v19, 5 }
  0xa5   : > { %v419_v29 = vrot.slane %v417_v20, 6  ;;  %440 = vrot.lane.b32.xlu0 %v349_v26, %s1239_s27  ;;  %v192_v30 = vpop.permute.xlu0 %191  ;;  %v222_v31 = vpop.permute.xlu1 %221  ;;  %v385_v44 = vsel %vm1348_vm8, %v376_v17, %v384_v21  ;;  %v722_v15 = vshrl.u32 %v520_v56, 16  ;;  %v528_v18 = vcombine.high %v520_v56, %v1245_v24 }
  0xa6   : > { %v402_v32 = vor.u32 %v401_v23, %v398_v22  ;;  %v462_v50 = vcombine.low %v1312_v0, %v192_v30 }
  0xa7   : > { %v420_v41 = vor.u32 %v419_v29, %v416_v28 }
  0xa8   : > { %v469_v42 = vrot.slane %v462_v50, %v1407_v61  ;;  %v403_v46 = vsel %vm1348_vm8, %v394_v12, %v402_v32  ;;  %v728_v12 = vshrl.u32 %v528_v18, 16 }
  0xa9   : > { %v234_v49 = vpop.permute.xlu0 %233  ;;  %444 = vrot.lane.b32.xlu0 %v385_v44, %s1239_s27  ;;  %v237_v0 = vpop.permute.xlu1 %236  ;;  %446 = vrot.lane.b32.xlu1 %v403_v46, %s1239_s27  ;;  %v421_v43 = vsel %vm1348_vm8, %v412_v53, %v420_v41 }
  0xaa   : > { %v478_v51 = vcombine.low %v469_v42, %v477_v34  ;;  %v572_v52 = vcombine.low %v234_v49, %v1359_v38  ;;  %v530_v37 = vcombine.low %v1395_v35, %v237_v0  ;;  %v479_v57 = vcombine.high %v469_v42, %v477_v34 }
  0xab   : > { %v734_v42 = vshrl.u32 %v527_v7, 16 }
  0xac   : > { %v1438_v55 = vrot.slane %v478_v51, %v1429_v47  ;;  %v579_v59 = vrot.slane %v572_v52, %v1407_v61  ;;  %v537_v36 = vrot.slane %v530_v37, %v1407_v61  ;;  %v493_v2 = vrot.slane %v479_v57, %v1429_v47 }
  0xad   : > { %v240_v58 = vpop.permute.xlu0 %239  ;;  %448 = vrot.lane.b32.xlu0 %v421_v43, %s1239_s27  ;;  %v243_v38 = vpop.permute.xlu1 %242  ;;  %450 = vrot.lane.b32.xlu1 %v431_v54, %s1239_s27  ;;  %v1249_v54 = vmov 0.0  }
  0xae   : > { %v564_v45 = vcombine.low %v222_v31, %v240_v58  ;;  %v538_v60 = vcombine.low %v1342_v25, %v243_v38  ;;  %v720_v35 = vpack.i.b16 %v520_v56, %v1438_v55  ;;  %v721_v8 = vshrl.u32 %v1438_v55, 16  ;;  %1164 = vmatprep.subr.bf16.mxu0 %v1249_v54  ;;  %1168 = vmatprep.mubr.msk.bf16.mxu0 %vm1254_vm12, %v1249_v54 }
  0xaf   : > { %v494_v25 = vcombine.high %v1438_v55, %v1245_v24  ;;  %v732_v14 = vpack.i.b16 %v527_v7, %v493_v2  ;;  %v733_v17 = vshrl.u32 %v493_v2, 16  ;;  %v495_v53 = vcombine.high %v493_v2, %v1245_v24 }
  0xb0   : > { %v571_v63 = vrot.slane %v564_v45, %v1407_v61  ;;  %v545_v1 = vrot.slane %v538_v60, %v1407_v61  ;;  %v723_v21 = vpack.i.b16 %v722_v15, %v721_v8  ;;  %v529_v55 = vcombine.high %v527_v7, %v1245_v24 }
  0xb1   : > { %v727_v23 = vshrl.u32 %v494_v25, 16  ;;  %v726_v50 = vpack.i.b16 %v528_v18, %v494_v25  ;;  %v735_v52 = vpack.i.b16 %v734_v42, %v733_v17  ;;  %v739_v38 = vshrl.u32 %v495_v53, 16 }
  0xb2   : > { %v580_v3 = vcombine.low %v571_v63, %v579_v59  ;;  %v581_v4 = vcombine.high %v571_v63, %v579_v59  ;;  %v546_v5 = vcombine.low %v537_v36, %v545_v1  ;;  %v547_v6 = vcombine.high %v537_v36, %v545_v1  ;;  %v443_v36 = vpop.permute.xlu1 %442  ;;  %v433_v63 = vpop.permute.xlu0 %432 }
  0xb3   : > { %v729_v34 = vpack.i.b16 %v728_v12, %v727_v23  ;;  %v738_v58 = vpack.i.b16 %v529_v55, %v495_v53  ;;  %v740_v45 = vshrl.u32 %v529_v55, 16 }
  0xb4   : > { %v588_v9 = vrot.slane %v580_v3, %v1429_v47  ;;  %v595_v10 = vrot.slane %v581_v4, %v1429_v47  ;;  %v554_v11 = vrot.slane %v546_v5, %v1429_v47  ;;  %v561_v13 = vrot.slane %v547_v6, %v1429_v47 }
  0xb5   : > { %v741_v62 = vpack.i.b16 %v740_v45, %v739_v38 }
  0xb6   : > { %v756_v39 = vpack.i.b16 %v595_v10, %v561_v13  ;;  %v745_v16 = vshrl.u32 %v554_v11, 16  ;;  %v746_v19 = vshrl.u32 %v588_v9, 16  ;;  %v562_v20 = vcombine.high %v554_v11, %v1245_v24 }
  0xb7   : > { %v596_v22 = vcombine.high %v588_v9, %v1245_v24  ;;  %v757_v26 = vshrl.u32 %v561_v13, 16  ;;  %v758_v30 = vshrl.u32 %v595_v10, 16  ;;  %v744_v33 = vpack.i.b16 %v588_v9, %v554_v11 }
  0xb8   : > { %v1145_v27 = vcombine.low %v732_v14, %v756_v39  ;;  %v747_v28 = vpack.i.b16 %v746_v19, %v745_v16  ;;  %v751_v29 = vshrl.u32 %v562_v20, 16  ;;  %v563_v44 = vcombine.high %v561_v13, %v1245_v24 }
  0xb9   : > { %v750_v31 = vpack.i.b16 %v596_v22, %v562_v20  ;;  %v752_v40 = vshrl.u32 %v596_v22, 16  ;;  %v759_v48 = vpack.i.b16 %v758_v30, %v757_v26  ;;  %v597_v49 = vcombine.high %v595_v10, %v1245_v24 }
  0xba   : > { %856 = vrot.lane.b32.xlu1 %v1145_v27, %s1246_s4  ;;  %v1139_v32 = vcombine.low %v723_v21, %v747_v28  ;;  %v1468_v0 = vcombine.low %v720_v35, %v744_v33  ;;  %v763_v56 = vshrl.u32 %v563_v44, 16 }
  0xbb   : > { %v753_v41 = vpack.i.b16 %v752_v40, %v751_v29  ;;  %v1141_v46 = vcombine.low %v726_v50, %v750_v31  ;;  %v1147_v37 = vcombine.low %v735_v52, %v759_v48  ;;  %v762_v43 = vpack.i.b16 %v597_v49, %v563_v44 }
  0xbc   : > { %826 = vrot.lane.b32.xlu0 %v1139_v32, %s1247_s5  ;;  %v764_v57 = vshrl.u32 %v597_v49, 16 }
  0xbd   : > { %v1143_v51 = vcombine.low %v729_v34, %v753_v41  ;;  %v1149_v59 = vcombine.low %v738_v58, %v762_v43 }
  0xbe   : > { %836 = vrot.lane.b32.xlu1 %v1141_v46, %s1248_s6  ;;  %v765_v60 = vpack.i.b16 %v764_v57, %v763_v56 }
  0xc0   : > { %846 = vrot.lane.b32.xlu0 %v1143_v51, %s1250_s7  ;;  %v1151_v35 = vcombine.low %v741_v62, %v765_v60 }
  0xc2   : > { %866 = vrot.lane.b32.xlu1 %v1147_v37, %s1251_s8 }
  0xc6   : > { %876 = vrot.lane.b32.xlu1 %v1149_v59, %s1252_s9 }
  0xca   : > { %886 = vrot.lane.b32.xlu1 %v1151_v35, %s1253_s10 }
 0x107   : > { %v435_v1 = vpop.permute.xlu1 %434 }
 0x108   : > { %v632_v5 = vcombine.low %v435_v1, %v443_v36 }
 0x10a   : > { %v639_v10 = vrot.slane %v632_v5, %v1407_v61 }
 0x10b   : > { %v439_v3 = vpop.permute.xlu1 %438 }
 0x10c   : > { %v437_v2 = vpop.permute.xlu0 %436 }
 0x117   : > { %v441_v4 = vpop.permute.xlu0 %440 }
 0x118   : > { %v598_v6 = vcombine.low %v433_v63, %v441_v4 }
 0x11a   : > { %v605_v11 = vrot.slane %v598_v6, %v1407_v61 }
 0x11b   : > { %v445_v7 = vpop.permute.xlu0 %444  ;;  %v447_v8 = vpop.permute.xlu1 %446 }
 0x11c   : > { %v606_v25 = vcombine.low %v437_v2, %v445_v7  ;;  %v640_v9 = vcombine.low %v439_v3, %v447_v8 }
 0x11e   : > { %v613_v13 = vrot.slane %v606_v25, %v1407_v61  ;;  %v647_v14 = vrot.slane %v640_v9, %v1407_v61 }
 0x11f   : > { %v449_v15 = vpop.permute.xlu0 %448  ;;  %v451_v18 = vpop.permute.xlu1 %450 }
 0x120   : > { %v614_v39 = vcombine.low %v605_v11, %v613_v13  ;;  %v615_v16 = vcombine.high %v605_v11, %v613_v13  ;;  %v648_v19 = vcombine.low %v639_v10, %v647_v14  ;;  %v649_v20 = vcombine.high %v639_v10, %v647_v14 }
 0x121   : > { %v666_v21 = vcombine.low %v449_v15, %v451_v18  ;;  %v674_v22 = vcombine.low %v451_v18, %v451_v18 }
 0x122   : > { %v1483_v23 = vrot.slane %v614_v39, %v1429_v47  ;;  %v629_v26 = vrot.slane %v615_v16, %v1429_v47  ;;  %v1487_v27 = vrot.slane %v648_v19, %v1429_v47  ;;  %v663_v28 = vrot.slane %v649_v20, %v1429_v47 }
 0x123   : > { %v673_v29 = vrot.slane %v666_v21, %v1407_v61  ;;  %v681_v30 = vrot.slane %v674_v22, %v1407_v61 }
 0x124   : > { %v781_v31 = vshrl.u32 %v629_v26, 16  ;;  %v782_v12 = vshrl.u32 %v663_v28, 16  ;;  %v769_v40 = vshrl.u32 %v1483_v23, 16  ;;  %v780_v34 = vpack.i.b16 %v663_v28, %v629_v26 }
 0x125   : > { %v682_v32 = vcombine.low %v673_v29, %v681_v30  ;;  %v683_v50 = vcombine.high %v673_v29, %v681_v30  ;;  %v700_v17 = vcombine.low %v681_v30, %v681_v30  ;;  %v701_v33 = vcombine.high %v681_v30, %v681_v30 }
 0x126   : > { %v770_v41 = vshrl.u32 %v1487_v27, 16  ;;  %v1495_v42 = vcombine.high %v629_v26, %v1245_v24  ;;  %v1498_v44 = vcombine.high %v663_v28, %v1245_v24  ;;  %v783_v51 = vpack.i.b16 %v782_v12, %v781_v31 }
 0x127   : > { %v690_v61 = vrot.slane %v682_v32, %v1429_v47  ;;  %v697_v46 = vrot.slane %v683_v50, %v1429_v47  ;;  %v715_v48 = vrot.slane %v701_v33, %v1429_v47  ;;  %v708_v49 = vrot.slane %v700_v17, %v1429_v47 }
 0x128   : > { %v771_v52 = vpack.i.b16 %v770_v41, %v769_v40  ;;  %v787_v53 = vshrl.u32 %v1495_v42, 16  ;;  %v788_v55 = vshrl.u32 %v1498_v44, 16  ;;  %v630_v45 = vcombine.high %v1483_v23, %v1245_v24 }
 0x129   : > { %v804_v37 = vpack.i.b16 %v715_v48, %v697_v46  ;;  %v805_v43 = vshrl.u32 %v697_v46, 16  ;;  %v806_v56 = vshrl.u32 %v715_v48, 16  ;;  %v793_v57 = vshrl.u32 %v690_v61, 16 }
 0x12a   : > { %v794_v58 = vshrl.u32 %v708_v49, 16  ;;  %v699_v38 = vcombine.high %v697_v46, %v1245_v24  ;;  %v717_v59 = vcombine.high %v715_v48, %v1245_v24  ;;  %v664_v62 = vcombine.high %v1487_v27, %v1245_v24 }
 0x12b   : > { %v1146_v60 = vcombine.low %v780_v34, %v804_v37  ;;  %v807_v47 = vpack.i.b16 %v806_v56, %v805_v43  ;;  %v698_v35 = vcombine.high %v690_v61, %v1245_v24  ;;  %v716_v3 = vcombine.high %v708_v49, %v1245_v24  ;;  %v1213_v43 = vld [vmem:[%s1568_s1] sm:$0xff]  }
 0x12c   : > { %v857_v36 = vpop.permute.xlu1 %856  ;;  %v795_v63 = vpack.i.b16 %v794_v58, %v793_v57  ;;  %v811_v1 = vshrl.u32 %v699_v38, 16  ;;  %v812_v2 = vshrl.u32 %v717_v59, 16  ;;  %v789_v7 = vpack.i.b16 %v788_v55, %v787_v53 }
 0x12d   : > { %858 = vrot.lane.b32.xlu0 %v1146_v60, %s1246_s4  ;;  %v1148_v4 = vcombine.low %v783_v51, %v807_v47  ;;  %v798_v9 = vpack.i.b16 %v716_v3, %v698_v35  ;;  %v799_v10 = vshrl.u32 %v698_v35, 16  ;;  %v800_v11 = vshrl.u32 %v716_v3, 16 }
 0x12e   : > { %v827_v5 = vpop.permute.xlu0 %826  ;;  %v1140_v6 = vcombine.low %v771_v52, %v795_v63  ;;  %v813_v8 = vpack.i.b16 %v812_v2, %v811_v1  ;;  %v774_v14 = vpack.i.b16 %v664_v62, %v630_v45  ;;  %v768_v24 = vpack.i.b16 %v1487_v27, %v1483_v23 }
 0x12f   : > { %v893_v25 = vsel %vm890_vm9, %v1468_v0, %v827_v5  ;;  %868 = vrot.lane.b32.xlu1 %v1148_v4, %s1251_s8  ;;  %v775_v18 = vshrl.u32 %v630_v45, 16  ;;  %v776_v39 = vshrl.u32 %v664_v62, 16  ;;  %v792_v16 = vpack.i.b16 %v708_v49, %v690_v61 }
 0x130   : > { %v837_v13 = vpop.permute.xlu1 %836  ;;  %v1152_v15 = vcombine.low %v789_v7, %v813_v8  ;;  %v1142_v20 = vcombine.low %v774_v14, %v798_v9  ;;  %v801_v21 = vpack.i.b16 %v800_v11, %v799_v10  ;;  %v810_v29 = vpack.i.b16 %v717_v59, %v699_v38 }
 0x131   : > { %828 = vrot.lane.b32.xlu0 %v1140_v6, %s1247_s5  ;;  %v899_v19 = vsel %vm897_vm10, %v893_v25, %v837_v13  ;;  %v1138_v22 = vcombine.low %v768_v24, %v792_v16  ;;  %v777_v27 = vpack.i.b16 %v776_v39, %v775_v18  ;;  %v786_v12 = vpack.i.b16 %v1498_v44, %v1495_v42 }
 0x132   : > { %v847_v0 = vpop.permute.xlu0 %846 }
 0x133   : > { %888 = vrot.lane.b32.xlu1 %v1152_v15, %s1253_s10  ;;  %v904_v23 = vsel %vm902_vm11, %v899_v19, %v847_v0  ;;  %v1144_v28 = vcombine.low %v777_v27, %v801_v21  ;;  %v1150_v32 = vcombine.low %v786_v12, %v810_v29 }
 0x134   : > { %v867_v26 = vpop.permute.xlu1 %866  ;;  %v909_v30 = vsel %vm907_vm13, %v904_v23, %v857_v36 }
 0x135   : > { %838 = vrot.lane.b32.xlu0 %v1142_v20, %s1248_s6  ;;  %v914_v40 = vsel %vm912_vm14, %v909_v30, %v867_v26 }
 0x138   : > { %v877_v31 = vpop.permute.xlu1 %876 }
 0x139   : > { %848 = vrot.lane.b32.xlu0 %v1144_v28, %s1250_s7  ;;  %v919_v50 = vsel %vm917_vm15, %v914_v40, %v877_v31 }
 0x13c   : > { %v887_v17 = vpop.permute.xlu1 %886 }
 0x13d   : > { %878 = vrot.lane.b32.xlu0 %v1150_v32, %s1252_s9  ;;  %v924_v33 = vsel %vm922_vm0, %v919_v50, %v887_v17 }
 0x13e   : > { %1165 = vmatpush3.bf16.msra.mxu0 %v924_v33 }
 0x13f   : > { %1166 = vmatprep.subr.bf16.mxu0 %v1249_v54 }
 0x19f   : > { %v859_v34 = vpop.permute.xlu0 %858 }
 0x1a1   : > { %v869_v46 = vpop.permute.xlu1 %868 }
 0x1a3   : > { %v829_v41 = vpop.permute.xlu0 %828 }
 0x1a4   : > { %v896_v42 = vsel %vm890_vm9, %v1138_v22, %v829_v41 }
 0x1a5   : > { %v889_v55 = vpop.permute.xlu1 %888 }
 0x1a7   : > { %v839_v61 = vpop.permute.xlu0 %838 }
 0x1a8   : > { %v901_v44 = vsel %vm897_vm10, %v896_v42, %v839_v61 }
 0x1ab   : > { %v849_v48 = vpop.permute.xlu0 %848 }
 0x1ac   : > { %v906_v49 = vsel %vm902_vm11, %v901_v44, %v849_v48 }
 0x1ad   : > { %v911_v51 = vsel %vm907_vm13, %v906_v49, %v859_v34 }
 0x1ae   : > { %v916_v52 = vsel %vm912_vm14, %v911_v51, %v869_v46 }
 0x1af   : > { %v879_v53 = vpop.permute.xlu0 %878 }
 0x1b0   : > { %v921_v54 = vsel %vm917_vm15, %v916_v52, %v879_v53 }
 0x1b1   : > { %v927_v37 = vsel %vm922_vm0, %v921_v54, %v889_v55 }
 0x1b2   : > { %1167 = vmatpush3.bf16.msra.mxu0 %v927_v37 }
 0x1b5   : > { %1169 = vmatmul.mubr.msk.bf16.vlgmr.msra.gmra.mrb[0].mxu0 %vm897_vm10, %v1213_v43 }
 0x288   : > { %v973_v56 = vpop.f32.mrb[0].mxu0 }
 0x289   : > { %980 = vst [vmem:[%s160_s22] sm:$0xff] %v973_v56  ;;  %982 = vadd.xlane.f32.xlu0 %v973_v56  ;;  %v1170_v57 = vpop.f32.mrb[1].mxu0  ;;  %v986_v59 = vmul.f32 %v973_v56, %v973_v56 }
 0x28a   : > { %v976_v58 = vpop.f32.mrb[2].mxu0 }
 0x28b   : > { %981 = vst [vmem:[%s160_s22 + $0x8] sm:$0xff] %v976_v58  ;;  %984 = vadd.xlane.f32.xlu1 %v976_v58  ;;  %v1171_v38 = vpop.f32.mrb[3].mxu0  ;;  %v987_v45 = vmul.f32 %v976_v58, %v976_v58 }
 0x28d   : > { %988 = vadd.xlane.f32.xlu0 %v986_v59 }
 0x290   : > { %v1041_v1 = vld [vmem:[%s160_s22] sm:$0xff] (%p1300_p4) }
 0x291   : > { %990 = vadd.xlane.f32.xlu0 %v987_v45  ;;  %1042 = vst [vmem:[%s1011_s28] sm:$0xff] (%p1300_p4), %v1041_v1 }
 0x292   : > { %v1043_v2 = vld [vmem:[%s160_s22 + $0x8] sm:$0xff] (%p1300_p4) }
 0x293   : > { %1044 = vst [vmem:[%s1011_s28 + $0x20] sm:$0xff] (%p1300_p4), %v1043_v2 }
 0x316   : > { %v983_v60 = vpop.xlane.xlu0 %982 }
 0x318   : > { %v985_v35 = vpop.xlane.xlu1 %984 }
 0x31a   : > { %v989_v47 = vpop.xlane.xlu0 %988  ;;  %1009 = sbr.rel (!%p1300_p4) target bundleno = 801 (0x321), region = 32 }
 0x31b   : > { %v993_v62 = vsel %vm992_vm1, %v983_v60, %v989_v47 }
 0x31c   : > { %996 = vst.msk [vmem:[%s177_s25] sm:$0xff] %vm995_vm2, %v993_v62 }
 0x31e   : > { %v991_v36 = vpop.xlane.xlu0 %990 }
 0x31f   : > { %v994_v63 = vsel %vm992_vm1, %v985_v35, %v991_v36 }
 0x320   : > { %997 = vst.msk [vmem:[%s177_s25 + $0x8] sm:$0xff] %vm995_vm2, %v994_v63 }
 0x321 PF: > { %p11_p8 = scmp.ge.s32.totalorder %s1290_s16, 6   ;;  %s1574_s12 = smov %s1232_s13 }
 0x322   : > { %s1575_s13 = smov %s1298_s19  ;;  %s1576_s14 = smov %s1290_s16 }
 0x323   :  { %13 = sbr.rel (!%p11_p8) target bundleno = 2 (0x2), region = 108 }

</bundles_post_ra>
